<compile_context>
chip_gen: v6e
topology: v6e:2x2x1
jax: 0.10.0
libtpu: 0.0.40
codegen_flags: <defaults>
</compile_context>

<pallas_src>
import functools

import jax
import jax.numpy as jnp
from jax.experimental import pallas as pl
from jax.experimental.pallas import tpu as pltpu


@functools.lru_cache(maxsize=None)
def _roll_sign():
    """Returns +1 if pltpu.roll matches jnp.roll (out[i] = in[i - shift]), else -1."""
    def probe(x_ref, o_ref):
        o_ref[...] = pltpu.roll(x_ref[...], shift=1, axis=1)

    x = jax.lax.broadcasted_iota(jnp.float32, (8, 128), 1)
    y = pl.pallas_call(
        probe, out_shape=jax.ShapeDtypeStruct((8, 128), jnp.float32))(x)
    return 1 if float(y[0, 1]) == 0.0 else -1


def _tile_config(batch, seq_len, requested_block_b):
    """Generation-aware tile sizing (v5e/v6e: 128 MiB VMEM, v7x: 64 MiB)."""
    try:
        vmem_cap = int(pltpu.get_tpu_info().vmem_capacity_bytes)
    except Exception:                       # no info -> assume smallest (v7x) VMEM
        vmem_cap = 64 * 1024 * 1024
    vmem_limit = int(0.85 * vmem_cap)       # raise the scoped limit above default
    if requested_block_b is not None:
        return int(requested_block_b), vmem_limit
    # ~1.4 KB of live VMEM per (sample, position): h1/h2 f32, bf16 im2col,
    # double-buffered x tile.  Keep the per-step footprint under ~40% of VMEM.
    cap = int((0.4 * vmem_cap) // (1400 * seq_len))
    cap = max(8, min(256, (cap // 8) * 8))
    # Don't pad a small batch up to a much larger tile, and keep >= 2 grid steps
    # when the batch allows (v7x has 2 TensorCores; v5e/v6e are unaffected).
    half = max(8, (((batch + 1) // 2) + 7) // 8 * 8)
    return min(cap, half), vmem_limit


def cnn_kernel(x_ref, w1_ref, t1_ref, w2_ref, t2_ref, wf_ref, bf_ref, out_ref,
               *, seq_len, k1, k2, roll_sign):
    """One batch tile, fully resident in VMEM.

    x_ref  : (1, 1, bt*L)     lane-flattened batch tile (f32)
    w1_ref : (C1, 8)          conv1 weights, BN1 scale folded, taps padded to 8 (f32)
    t1_ref : (C1, 1)          folded conv1 bias + BN1 shift
    w2_ref : (C2, K2*C1)      tap-major conv2 weights, BN2 scale folded (bf16)
    t2_ref : (C2, 1)          folded conv2 bias + BN2 shift
    wf_ref : (NC, C2)         fc weight (f32)
    bf_ref : (NC, 1)          fc bias
    out_ref: (1, NC, bt)      logits for this tile
    """
    _, nc, bt = out_ref.shape
    btl = x_ref.shape[-1]
    c1 = t1_ref.shape[0]
    c2 = t2_ref.shape[0]
    L = seq_len

    xf = x_ref[0]                                            # (1, bt*L) f32
    pos = jax.lax.broadcasted_iota(jnp.int32, (1, btl), 1) % L

    masks = {}                                               # hoisted, shared by all taps

    def shift_in_sample(v, s):
        # out[..., m] = v[..., m - s] within each length-L sample, zero at edges
        # (matches Conv1d zero padding).  Rolls run on the XLU; masks are memoized.
        if s == 0:
            return v
        r = pltpu.roll(v, shift=(roll_sign * s) % btl, axis=1)
        if s not in masks:
            masks[s] = (pos < s) if s > 0 else (pos >= L + s)
        return jnp.where(masks[s], jnp.zeros([], r.dtype), r)

    # ---- conv1 (1 -> C1, k=5, pad=2) + folded BN1 + ReLU: one f32 MXU matmul ----
    pad1 = (k1 - 1) // 2
    rows = [shift_in_sample(xf, pad1 - k) for k in range(k1)]
    rows += [jnp.zeros_like(xf)] * (w1_ref.shape[1] - k1)    # pad taps to 8 sublanes
    xim = jnp.concatenate(rows, axis=0)                      # (8, bt*L) f32
    h1 = jnp.dot(w1_ref[...], xim, preferred_element_type=jnp.float32) + t1_ref[...]
    # Cast once after the ReLU; conv2 rolls/masks run on the packed bf16 tensor.
    h1 = jnp.maximum(h1, 0.0).astype(w2_ref.dtype)           # (C1, bt*L)

    # ---- conv2 (C1 -> C2, k=3, pad=1) + folded BN2 + ReLU: fused K=192 matmul ----
    pad2 = (k2 - 1) // 2
    im2col = jnp.concatenate(
        [shift_in_sample(h1, pad2 - k) for k in range(k2)], axis=0)  # (K2*C1, bt*L)
    h2 = jnp.dot(w2_ref[...], im2col, preferred_element_type=jnp.float32) + t2_ref[...]
    h2 = jnp.maximum(h2, 0.0)                                # (C2, bt*L) f32

    # ---- AdaptiveMaxPool1d(1): per-sample max over L (single reshape + reduce) ----
    pooled = jnp.max(h2.reshape(c2, bt, L), axis=-1)         # (C2, bt)

    # TODO(synk): Dropout(0.5) is identity in eval mode; training-mode RNG path
    # (pltpu.prng_*) is not implemented.

    # ---- fc: (NC, C2) @ (C2, bt) + bias; one small store per grid step ----
    out_ref[0] = (jnp.dot(wf_ref[...], pooled,
                          preferred_element_type=jnp.float32) + bf_ref[...])


def cnn_forward(x, params, *, block_b=None, precise=False):
    """Pallas-backed eval-mode forward.  x: (B, L) f32 -> (B, num_classes).

    block_b=None picks a VMEM-capacity-aware batch tile.  precise=True keeps the
    conv2 matmul operands in f32 for tighter parity with the f32 reference.
    """
    B, L = x.shape
    bb, vmem_limit = _tile_config(B, L, block_b)
    Bp = ((B + bb - 1) // bb) * bb
    if Bp != B:                               # pad the batch; never grow the tile to B
        x = jnp.pad(x, ((0, Bp - B), (0, 0)))
    conv_dtype = jnp.float32 if precise else jnp.bfloat16
    out = _cnn_forward(x, params, bb, vmem_limit, _roll_sign(), conv_dtype)
    return out[:B]


@functools.partial(jax.jit, static_argnums=(2, 3, 4, 5))
def _cnn_forward(x, p, block_b, vmem_limit, roll_sign, conv_dtype):
    B, L = x.shape
    eps = 1e-5
    c1, _, k1 = p["w1"].shape
    c2, _, k2 = p["w2"].shape
    nc = p["wf"].shape[0]

    # Fold conv bias + BatchNorm (eval, running stats) into per-channel
    # scale/shift, then fold the scale into the conv weights (host side).
    s1 = p["g1"] * jax.lax.rsqrt(p["v1"] + eps)
    t1 = ((p["b1"] - p["m1"]) * s1 + p["be1"]).reshape(c1, 1)
    s2 = p["g2"] * jax.lax.rsqrt(p["v2"] + eps)
    t2 = ((p["b2"] - p["m2"]) * s2 + p["be2"]).reshape(c2, 1)

    ktaps = max(8, ((k1 + 7) // 8) * 8)                        # conv1 taps padded to 8
    w1p = jnp.zeros((c1, ktaps), jnp.float32).at[:, :k1].set(
        p["w1"][:, 0, :] * s1[:, None])                        # (C1, 8) f32
    # (C2, C1, K2) -> (C2, K2*C1) tap-major, matching the in-kernel im2col order.
    w2f = jnp.transpose(p["w2"] * s2[:, None, None], (0, 2, 1)).reshape(c2, k2 * c1)
    w2f = w2f.astype(conv_dtype)
    wf = p["wf"].astype(jnp.float32)
    bf = p["bf"].reshape(nc, 1).astype(jnp.float32)

    nb = B // block_b
    x3 = x.reshape(nb, 1, block_b * L)                         # lane-flattened tiles

    kernel = functools.partial(cnn_kernel, seq_len=L, k1=k1, k2=k2,
                               roll_sign=roll_sign)
    out3 = pl.pallas_call(
        kernel,
        grid=(nb,),
        in_specs=[
            pl.BlockSpec((1, 1, block_b * L), lambda i: (i, 0, 0)),
            pl.BlockSpec((c1, ktaps), lambda i: (0, 0)),
            pl.BlockSpec((c1, 1), lambda i: (0, 0)),
            pl.BlockSpec((c2, k2 * c1), lambda i: (0, 0)),
            pl.BlockSpec((c2, 1), lambda i: (0, 0)),
            pl.BlockSpec((nc, c2), lambda i: (0, 0)),
            pl.BlockSpec((nc, 1), lambda i: (0, 0)),
        ],
        out_specs=pl.BlockSpec((1, nc, block_b), lambda i: (i, 0, 0)),
        out_shape=jax.ShapeDtypeStruct((nb, nc, block_b), jnp.float32),
        compiler_params=pltpu.CompilerParams(
            dimension_semantics=("parallel",),
            vmem_limit_bytes=vmem_limit),
    )(x3, w1p, t1, w2f, t2, wf, bf)

    # (nb, NC, block_b) -> (B, NC); tiny transpose handled by XLA outside.
    return jnp.transpose(out3, (0, 2, 1)).reshape(B, nc)


def make_params(key, num_classes=2, c1=64, c2=128, k1=5, k2=3):
    ks = jax.random.split(key, 14)
    return dict(
        w1=jax.random.normal(ks[0], (c1, 1, k1), jnp.float32) * 0.2,
        b1=jax.random.normal(ks[1], (c1,), jnp.float32) * 0.1,
        g1=jax.random.uniform(ks[2], (c1,), jnp.float32, 0.5, 1.5),
        be1=jax.random.normal(ks[3], (c1,), jnp.float32) * 0.1,
        m1=jax.random.normal(ks[4], (c1,), jnp.float32) * 0.1,
        v1=jax.random.uniform(ks[5], (c1,), jnp.float32, 0.5, 1.5),
        w2=jax.random.normal(ks[6], (c2, c1, k2), jnp.float32) * 0.1,
        b2=jax.random.normal(ks[7], (c2,), jnp.float32) * 0.1,
        g2=jax.random.uniform(ks[8], (c2,), jnp.float32, 0.5, 1.5),
        be2=jax.random.normal(ks[9], (c2,), jnp.float32) * 0.1,
        m2=jax.random.normal(ks[10], (c2,), jnp.float32) * 0.1,
        v2=jax.random.uniform(ks[11], (c2,), jnp.float32, 0.5, 1.5),
        wf=jax.random.normal(ks[12], (num_classes, c2), jnp.float32) * 0.1,
        bf=jax.random.normal(ks[13], (num_classes,), jnp.float32) * 0.1,
    )


def ref_forward(x, p):
    """Pure-JAX reference mirroring PyTorch eval-mode semantics."""
    eps = 1e-5
    hi = jax.lax.Precision.HIGHEST
    h = x[:, None, :]
    h = jax.lax.conv_general_dilated(h, p["w1"], (1,), [(2, 2)],
                                     dimension_numbers=("NCH", "OIH", "NCH"),
                                     precision=hi) + p["b1"][None, :, None]
    h = (h - p["m1"][None, :, None]) / jnp.sqrt(p["v1"][None, :, None] + eps)
    h = h * p["g1"][None, :, None] + p["be1"][None, :, None]
    h = jnp.maximum(h, 0.0)
    h = jax.lax.conv_general_dilated(h, p["w2"], (1,), [(1, 1)],
                                     dimension_numbers=("NCH", "OIH", "NCH"),
                                     precision=hi) + p["b2"][None, :, None]
    h = (h - p["m2"][None, :, None]) / jnp.sqrt(p["v2"][None, :, None] + eps)
    h = h * p["g2"][None, :, None] + p["be2"][None, :, None]
    h = jnp.maximum(h, 0.0)
    pooled = jnp.max(h, axis=-1)
    return jnp.dot(pooled, p["wf"].T, precision=hi) + p["bf"]


if __name__ == "__main__":
    B, L, NC = 16, 128, 2     # small shapes consistent with CNNModel(input_size=L)
    key = jax.random.PRNGKey(0)
    kx, kp = jax.random.split(key)
    x = jax.random.normal(kx, (B, L), jnp.float32)
    params = make_params(kp, num_classes=NC)

    # Auto-sized tile (VMEM-aware); small batch -> small tile, >=2 grid steps.
    out = jax.block_until_ready(cnn_forward(x, params))
    assert out.shape == (B, NC), out.shape
    ref = jax.block_until_ready(ref_forward(x, params))
    assert jnp.allclose(out, ref, rtol=2e-2, atol=2e-2), (out, ref)

    # Exercise the batch-padding path (B not a multiple of block_b) and a
    # multi-step grid with an explicit tile size.
    xb = jax.random.normal(kx, (21, L), jnp.float32)
    outb = jax.block_until_ready(cnn_forward(xb, params, block_b=8))
    refb = jax.block_until_ready(ref_forward(xb, params))
    assert outb.shape == (21, NC), outb.shape
    assert jnp.allclose(outb, refb, rtol=2e-2, atol=2e-2), (outb, refb)

    print("KERNEL_OK")
</pallas_src>

<mosaic_0001>
module attributes {stable_mosaic.version = 11 : i64} {
  func.func @probe(%arg0: memref<8x128xf32, #tpu.memory_space<vmem>>, %arg1: memref<8x128xf32, #tpu.memory_space<vmem>>) attributes {dimension_semantics = [], scalar_prefetch = 0 : i64, scratch_operands = 0 : i64, tpu.core_type = #tpu.core_type<tc>} {
    %c0 = arith.constant 0 : index
    %c0_0 = arith.constant 0 : index
    %0 = vector.load %arg0[%c0, %c0_0] : memref<8x128xf32, #tpu.memory_space<vmem>>, vector<8x128xf32>
    %c1_i32 = arith.constant 1 : i32
    %1 = tpu.dynamic_rotate %0 by %c1_i32 dim 1 : vector<8x128xf32>, i32 -> vector<8x128xf32>
    %c0_1 = arith.constant 0 : index
    %c0_2 = arith.constant 0 : index
    %2 = vector.load %arg1[%c0_1, %c0_2] : memref<8x128xf32, #tpu.memory_space<vmem>>, vector<8x128xf32>
    tpu.vector_store %arg1[%c0_1, %c0_2], %1 {strides = array<i32>} : memref<8x128xf32, #tpu.memory_space<vmem>>, vector<8x128xf32>,
    return
  }
}

</mosaic_0001>

<bundles_post_ra>
// kernel: tpu_custom_call.1
= control target key start
LH: loop header
LB: loop body
LE: loop exit
PB: predicated region body
PF: predicated region fallthrough
CT: control target
= control target key end

     0   :  { %6 = vsyncpa [#allocation3], 0  ;;  %s106_s0 = inlined_call_operand.hbm [shape: f32[8,128], index: 0, kind: input, shape index: {}]   ;;  %s107_s1 = inlined_call_operand.hbm [shape: f32[8,128], index: 1, kind: output, shape index: {}]  }
   0x1   :  { %7 = vsyncpa [#allocation4], 0  ;;  %s87_s6 = smov [#allocation2]  }
   0x2   :  { %s14_s7 = sshll.u32 %s87_s6, 4  ;;  %s15_s7 = int_to_ptr.vmem [resolvable:$true] %s14_s7 }
   0x3   :  { %s51_s8 = scalar_lea.vmem %s15_s7, 128  ;;  %p56_p1 = scmp.lt.s32.totalorder %s15_s7, %s15_s7 }
   0x4   :  { %p52_p0 = scmp.ne.s32.totalorder %s15_s7, %s51_s8  ;;  %p57_p2 = scmp.lt.s32.totalorder %s51_s8, %s51_s8 }
   0x6   :  { %p58_p3 = por %p57_p2, %p56_p1 }
   0x8   :  { %p59_p4 = pnand %p58_p3, %p52_p0 }
   0xa   :  { %62 = shalt.err (!%p59_p4)
}
   0xb   :  { %17 = dma.hbm_to_vmem [thread:$0]  %s106_s0, 128, %s15_s7, [#allocation3]  }
   0xc   :  { %83 = dma.done.wait [#allocation3], 128  }
   0xd   :  { %84 = vsyncadd [#allocation3], 4294967168  ;;  %v21_v0 = vld [vmem:[#allocation2] sm:$0xff]  ;;  %s88_s11 = smov 1   ;;  %s89_s12 = smov [#allocation5]  }
   0xe   :  { %22 = vrot.lane.b32.xlu0 %v21_v0, %s88_s11  ;;  %s31_s13 = sshll.u32 %s89_s12, 4  ;;  %s32_s13 = int_to_ptr.vmem [resolvable:$true] %s31_s13 }
   0xf   :  { %s63_s14 = scalar_lea.vmem %s32_s13, 128  ;;  %p68_p6 = scmp.lt.s32.totalorder %s32_s13, %s32_s13 }
  0x10   :  { %p64_p5 = scmp.ne.s32.totalorder %s32_s13, %s63_s14  ;;  %p69_p7 = scmp.lt.s32.totalorder %s63_s14, %s63_s14 }
  0x12   :  { %p70_p8 = por %p69_p7, %p68_p6 }
  0x14   :  { %p71_p9 = pnand %p70_p8, %p64_p5 }
  0x80   :  { %v23_v1 = vpop.permute.xlu0 %22 }
  0x81   :  { %24 = vst [vmem:[#allocation5] sm:$0xff] %v23_v1 }
  0x82   :  { %74 = shalt.err (!%p71_p9)
}
  0x83   :  { %34 = dma.vmem_to_hbm [thread:$0]  %s32_s13, 128, %s107_s1, [#allocation4]  }
  0x84   :  { %85 = dma.done.wait [#allocation4], 128  }
  0x85   :  { %86 = vsyncadd [#allocation4], 4294967168 }
  0x86   :  { %38 = vsyncpa [#allocation3], 1 }
  0x87   :  { %39 = vsyncpa [#allocation4], 1 }

</bundles_post_ra>
